<compile_context>
chip_gen: v5e
topology: v5e:2x2
jax: 0.10.0
libtpu: 0.0.40
codegen_flags: <defaults>
</compile_context>

<pallas_src>
import math
import jax
import jax.numpy as jnp
from jax import lax
from jax.experimental import pallas as pl
from jax.experimental.pallas import tpu as pltpu


def multiscale_temporal_conv_forward(x_nchw, params, *, kernel_size=3,
                                     dilations=(1, 2, 3, 4), eps=1e-5):
    """Forward of MultiScale_TemporalConv (training-mode BatchNorm, stride=1).

    x_nchw : (N, C_in, T, V) float32 (PyTorch NCHW).
    params : dict of per-branch parameters in PyTorch layouts (see __main__).
    Returns (N, C_out, T, V) float32 with C_out = (len(dilations)+2) * branch_channels.
    """
    # TODO(synk): stride > 1 and the identity / no-residual configurations are not
    # implemented (the module defaults used here are stride=1 with a conv residual).
    # TODO(synk): BatchNorm running_mean/running_var buffer updates (training
    # bookkeeping) are not modeled; normalization uses batch statistics exactly as
    # PyTorch does in training mode.
    N, C_in, T, V = x_nchw.shape
    K = kernel_size
    nd = len(dilations)
    Cb = params['w1'][0].shape[0]            # branch channels
    C_out = (nd + 2) * Cb                    # channels of the concatenated output
    TV = T * V
    n_relu = (nd + 1) * Cb                   # stem channels that pass through ReLU
    n_stem = (nd + 2) * Cb + C_out           # stem channels incl. residual (= 2*C_out)
    n_bn2 = (nd + 1) * Cb                    # second-level BN channels (nd convs + pool)
    f32 = jnp.float32

    # ---- parameter packing (tiny, wrapper-side) ---------------------------------------
    # Stem rows = [4 dilation branches, pool branch, plain 1x1 branch, residual] 1x1 convs.
    w_stem = jnp.concatenate(
        [params['w1'][i][:, :, 0, 0] for i in range(nd + 2)]
        + [params['wr'][:, :, 0, 0]], axis=0).astype(f32)                  # (n_stem, C_in)
    gamma1 = jnp.concatenate([params['g1'][i] for i in range(nd + 2)]
                             + [params['gr']]).astype(f32)                 # (n_stem,)
    beta1 = jnp.concatenate([params['be1'][i] for i in range(nd + 2)]
                            + [params['ber']]).astype(f32)
    # Temporal conv weights with the K taps packed along the contraction dim:
    #   rows [i*Cb:(i+1)*Cb] = [Wt_i[tap0] | Wt_i[tap1] | ...]  ((out, in) blocks).
    w_temp = jnp.concatenate(
        [jnp.concatenate([params['wt'][i][:, :, k, 0] for k in range(K)], axis=1)
         for i in range(nd)], axis=0).astype(f32)                          # (nd*Cb, K*Cb)
    gamma2 = jnp.concatenate([params['g2'][i] for i in range(nd)]
                             + [params['gp']]).astype(f32)                 # (n_bn2,)
    beta2 = jnp.concatenate([params['be2'][i] for i in range(nd)]
                            + [params['bep']]).astype(f32)
    # NOTE: conv biases (params['b1_c'], params['bt'], params['br']) are intentionally
    # dropped — a bias added before a training-mode BatchNorm cancels exactly.

    x2 = x_nchw.reshape(N, C_in, TV).astype(f32)     # NCHW -> (N, C_in, T*V), free reshape

    # ---- in-kernel helpers (traced inside each kernel) --------------------------------
    def _tshift(a, s, fill=0.0):
        # a: (rows, T*V) channels-major slab; b[:, t*V+v] = a[:, (t+s)*V+v], `fill` where
        # t+s falls outside [0, T).  Shifts are whole multiples of V, so this is exactly
        # the Conv2d / MaxPool2d temporal halo (no padded x copy in HBM).
        if s == 0:
            return a
        off = abs(s) * V
        pad = jnp.full((a.shape[0], off), fill, a.dtype)
        if s > 0:
            return jnp.concatenate([a[:, off:], pad], axis=1)
        return jnp.concatenate([pad, a[:, :TV - off]], axis=1)

    def _stem_act(x_ref, w_ref, a1_ref, b1_ref):
        # Fused stem (all 1x1 convs + residual 1x1) + BN1 (+ ReLU on first n_relu rows).
        p = jnp.dot(w_ref[...], x_ref[0], preferred_element_type=f32)      # (n_stem, TV)
        p = p * a1_ref[...] + b1_ref[...]
        row = lax.broadcasted_iota(jnp.int32, p.shape, 0)
        return jnp.where(row < n_relu, jnp.maximum(p, 0.0), p)

    def _branch_pre(p, wt_ref):
        # Second-stage pre-BN activations: nd dilated temporal convs + (3,1) max-pool.
        outs = []
        for i, d in enumerate(dilations):
            pi = p[i * Cb:(i + 1) * Cb, :]
            rhs = jnp.concatenate(
                [_tshift(pi, (k - K // 2) * d) for k in range(K)], axis=0)  # (K*Cb, TV)
            outs.append(jnp.dot(wt_ref[i * Cb:(i + 1) * Cb, :], rhs,
                                preferred_element_type=f32))                # (Cb, TV)
        pp = p[nd * Cb:(nd + 1) * Cb, :]          # pool branch input (post-ReLU >= 0, so
        outs.append(jnp.maximum(                  # the -1e30 halo never wins the max)
            jnp.maximum(_tshift(pp, -1, fill=-1e30), pp), _tshift(pp, 1, fill=-1e30)))
        return jnp.concatenate(outs, axis=0)      # (n_bn2, TV)

    # ---- kernels -----------------------------------------------------------------------
    def stats1_kernel(x_ref, w_ref, s_ref, q_ref):
        p = jnp.dot(w_ref[...], x_ref[0], preferred_element_type=f32)      # (n_stem, TV)
        s_ref[0] = jnp.sum(p, axis=1, keepdims=True)
        q_ref[0] = jnp.sum(p * p, axis=1, keepdims=True)

    def stats2_kernel(x_ref, w_ref, a1_ref, b1_ref, wt_ref, s_ref, q_ref):
        y = _branch_pre(_stem_act(x_ref, w_ref, a1_ref, b1_ref), wt_ref)
        s_ref[0] = jnp.sum(y, axis=1, keepdims=True)
        q_ref[0] = jnp.sum(y * y, axis=1, keepdims=True)

    def out_kernel(x_ref, w_ref, a1_ref, b1_ref, wt_ref, a2_ref, b2_ref, o_ref):
        p = _stem_act(x_ref, w_ref, a1_ref, b1_ref)
        y = _branch_pre(p, wt_ref) * a2_ref[...] + b2_ref[...]             # (n_bn2, TV)
        # 6-branch concat (dilated convs, pool branch, plain 1x1 branch) + residual.
        branches = jnp.concatenate([y, p[n_relu:n_relu + Cb, :]], axis=0)  # (C_out, TV)
        o_ref[0] = branches + p[n_relu + Cb:, :]

    # ---- specs -------------------------------------------------------------------------
    x_spec = pl.BlockSpec((1, C_in, TV), lambda n: (n, 0, 0))
    wstem_spec = pl.BlockSpec((n_stem, C_in), lambda n: (0, 0))
    wtemp_spec = pl.BlockSpec((nd * Cb, K * Cb), lambda n: (0, 0))
    col1_spec = pl.BlockSpec((n_stem, 1), lambda n: (0, 0))
    col2_spec = pl.BlockSpec((n_bn2, 1), lambda n: (0, 0))
    stat1_spec = pl.BlockSpec((1, n_stem, 1), lambda n: (n, 0, 0))
    stat2_spec = pl.BlockSpec((1, n_bn2, 1), lambda n: (n, 0, 0))
    parallel = pltpu.CompilerParams(dimension_semantics=("parallel",))

    # ---- pass A: first-level BN statistics (per-sample partials, reduced in JAX) -------
    s1, q1 = pl.pallas_call(
        stats1_kernel,
        out_shape=(jax.ShapeDtypeStruct((N, n_stem, 1), f32),
                   jax.ShapeDtypeStruct((N, n_stem, 1), f32)),
        grid_spec=pltpu.PrefetchScalarGridSpec(
            num_scalar_prefetch=0, grid=(N,),
            in_specs=[x_spec, wstem_spec],
            out_specs=(stat1_spec, stat1_spec)),
        compiler_params=parallel,
    )(x2, w_stem)

    cnt = float(N * TV)
    mean1 = jnp.sum(s1[:, :, 0], axis=0) / cnt
    var1 = jnp.sum(q1[:, :, 0], axis=0) / cnt - mean1 * mean1
    scale1 = gamma1 * lax.rsqrt(var1 + eps)
    shift1 = beta1 - mean1 * scale1
    a1 = scale1.reshape(n_stem, 1)
    b1 = shift1.reshape(n_stem, 1)

    # ---- pass B: second-level BN statistics (stem recomputed, nothing through HBM) -----
    s2, q2 = pl.pallas_call(
        stats2_kernel,
        out_shape=(jax.ShapeDtypeStruct((N, n_bn2, 1), f32),
                   jax.ShapeDtypeStruct((N, n_bn2, 1), f32)),
        grid_spec=pltpu.PrefetchScalarGridSpec(
            num_scalar_prefetch=0, grid=(N,),
            in_specs=[x_spec, wstem_spec, col1_spec, col1_spec, wtemp_spec],
            out_specs=(stat2_spec, stat2_spec)),
        compiler_params=parallel,
    )(x2, w_stem, a1, b1, w_temp)

    mean2 = jnp.sum(s2[:, :, 0], axis=0) / cnt
    var2 = jnp.sum(q2[:, :, 0], axis=0) / cnt - mean2 * mean2
    scale2 = gamma2 * lax.rsqrt(var2 + eps)
    shift2 = beta2 - mean2 * scale2
    a2 = scale2.reshape(n_bn2, 1)
    b2 = shift2.reshape(n_bn2, 1)

    # ---- pass C: recompute, apply both BNs, assemble, single lane-dense store ----------
    out = pl.pallas_call(
        out_kernel,
        out_shape=jax.ShapeDtypeStruct((N, C_out, TV), f32),
        grid_spec=pltpu.PrefetchScalarGridSpec(
            num_scalar_prefetch=0, grid=(N,),
            in_specs=[x_spec, wstem_spec, col1_spec, col1_spec, wtemp_spec,
                      col2_spec, col2_spec],
            out_specs=pl.BlockSpec((1, C_out, TV), lambda n: (n, 0, 0))),
        compiler_params=parallel,
    )(x2, w_stem, a1, b1, w_temp, a2, b2)

    return out.reshape(N, C_out, T, V)        # (N, C_out, T*V) is already NCHW-ordered


# ------------------------------ pure-JAX reference -------------------------------------
def _bn_train(y, gamma, beta, eps=1e-5):
    mean = jnp.mean(y, axis=(0, 2, 3), keepdims=True)
    var = jnp.mean(jnp.square(y - mean), axis=(0, 2, 3), keepdims=True)
    return ((y - mean) * lax.rsqrt(var + eps) * gamma[None, :, None, None]
            + beta[None, :, None, None])


def _conv_nchw(x, w, b, *, pad_t=0, dil_t=1):
    y = lax.conv_general_dilated(
        x, w, window_strides=(1, 1), padding=((pad_t, pad_t), (0, 0)),
        rhs_dilation=(dil_t, 1), dimension_numbers=('NCHW', 'OIHW', 'NCHW'),
        precision=lax.Precision.HIGHEST)
    return y + b[None, :, None, None]


def _maxpool_t3(x):
    return lax.reduce_window(x, -jnp.inf, lax.max, window_dimensions=(1, 1, 3, 1),
                             window_strides=(1, 1, 1, 1),
                             padding=((0, 0), (0, 0), (1, 1), (0, 0)))


def reference(x, params, *, kernel_size=3, dilations=(1, 2, 3, 4), eps=1e-5):
    """Pure-JAX mirror of MultiScale_TemporalConv.forward (training-mode BN)."""
    K = kernel_size
    nd = len(dilations)
    outs = []
    for i, d in enumerate(dilations):
        p = _conv_nchw(x, params['w1'][i], params['b1_c'][i])
        p = jax.nn.relu(_bn_train(p, params['g1'][i], params['be1'][i], eps))
        pad = (K + (K - 1) * (d - 1) - 1) // 2
        q = _conv_nchw(p, params['wt'][i], params['bt'][i], pad_t=pad, dil_t=d)
        outs.append(_bn_train(q, params['g2'][i], params['be2'][i], eps))
    p = _conv_nchw(x, params['w1'][nd], params['b1_c'][nd])
    p = jax.nn.relu(_bn_train(p, params['g1'][nd], params['be1'][nd], eps))
    outs.append(_bn_train(_maxpool_t3(p), params['gp'], params['bep'], eps))
    p = _conv_nchw(x, params['w1'][nd + 1], params['b1_c'][nd + 1])
    outs.append(_bn_train(p, params['g1'][nd + 1], params['be1'][nd + 1], eps))
    res = _bn_train(_conv_nchw(x, params['wr'], params['br']),
                    params['gr'], params['ber'], eps)
    return jnp.concatenate(outs, axis=1) + res


if __name__ == "__main__":
    N, C_in, T, V = 2, 4, 16, 16
    K, dilations = 3, (1, 2, 3, 4)
    Cb = 4                                     # branch channels
    C_out = (len(dilations) + 2) * Cb          # 24 output channels (6 branches)

    keys = iter(jax.random.split(jax.random.PRNGKey(0), 64))

    def nrm(shape, scale):
        return scale * jax.random.normal(next(keys), shape, jnp.float32)

    # Parameters in the PyTorch module's layouts (Conv2d OIHW, BatchNorm per-channel).
    params = {
        'w1':   [nrm((Cb, C_in, 1, 1), math.sqrt(2.0 / Cb)) for _ in range(6)],
        'b1_c': [nrm((Cb,), 0.1) for _ in range(6)],
        'g1':   [1.0 + nrm((Cb,), 0.05) for _ in range(6)],
        'be1':  [nrm((Cb,), 0.1) for _ in range(6)],
        'wt':   [nrm((Cb, Cb, K, 1), math.sqrt(2.0 / (Cb * K))) for _ in range(4)],
        'bt':   [nrm((Cb,), 0.1) for _ in range(4)],
        'g2':   [1.0 + nrm((Cb,), 0.05) for _ in range(4)],
        'be2':  [nrm((Cb,), 0.1) for _ in range(4)],
        'gp':   1.0 + nrm((Cb,), 0.05),
        'bep':  nrm((Cb,), 0.1),
        'wr':   nrm((C_out, C_in, 1, 1), math.sqrt(2.0 / C_out)),
        'br':   nrm((C_out,), 0.1),
        'gr':   1.0 + nrm((C_out,), 0.05),
        'ber':  nrm((C_out,), 0.1),
    }
    x = jax.random.normal(next(keys), (N, C_in, T, V), jnp.float32)

    out = multiscale_temporal_conv_forward(x, params, kernel_size=K, dilations=dilations)
    out = jax.block_until_ready(out)
    assert out.shape == (N, C_out, T, V), out.shape

    ref = reference(x, params, kernel_size=K, dilations=dilations)
    err = float(jnp.max(jnp.abs(out - ref)))
    assert bool(jnp.allclose(out, ref, atol=2e-3, rtol=2e-3)), err
    print("KERNEL_OK")
</pallas_src>

<mosaic_0001>
module attributes {stable_mosaic.version = 11 : i64} {
  func.func @stats1_kernel(%arg0: i32, %arg1: memref<1x4x256xf32, #tpu.memory_space<vmem>>, %arg2: memref<48x4xf32, #tpu.memory_space<vmem>>, %arg3: memref<1x48x1xf32, #tpu.memory_space<vmem>>, %arg4: memref<1x48x1xf32, #tpu.memory_space<vmem>>) attributes {dimension_semantics = [#tpu.dimension_semantics<parallel>], iteration_bounds = array<i64: 2>, scalar_prefetch = 0 : i64, scratch_operands = 0 : i64, tpu.core_type = #tpu.core_type<tc>, window_params = [{transform_indices = @transform_0, window_bounds = array<i64: 1, 4, 256>}, {pipeline_mode = #tpu.pipeline_mode<synchronous>, transform_indices = @transform_1, window_bounds = array<i64: 48, 4>}, {transform_indices = @transform_2, window_bounds = array<i64: 1, 48, 1>}, {transform_indices = @transform_3, window_bounds = array<i64: 1, 48, 1>}]} {
    %c0 = arith.constant 0 : index
    %c0_0 = arith.constant 0 : index
    %0 = vector.load %arg2[%c0, %c0_0] : memref<48x4xf32, #tpu.memory_space<vmem>>, vector<48x4xf32>
    %c0_1 = arith.constant 0 : index
    %c0_2 = arith.constant 0 : index
    %c0_3 = arith.constant 0 : index
    %1 = vector.load %arg1[%c0_1, %c0_2, %c0_3] : memref<1x4x256xf32, #tpu.memory_space<vmem>>, vector<1x4x256xf32>
    %2 = vector.shape_cast %1 : vector<1x4x256xf32> to vector<4x256xf32>
    %cst = arith.constant dense<0.000000e+00> : vector<48x256xf32>
    %3 = tpu.matmul %0, %2, %cst {dimension_numbers = #tpu.dot_dimension_numbers<[1], [0], [0], [1], [0, 0, 1, 1], [], []>} : vector<48x4xf32>, vector<4x256xf32>, vector<48x256xf32> -> vector<48x256xf32>
    %cst_4 = arith.constant dense<0.000000e+00> : vector<48xf32>
    %4 = vector.multi_reduction <add>, %3, %cst_4 [1] : vector<48x256xf32> to vector<48xf32>
    %5 = vector.shape_cast %4 : vector<48xf32> to vector<48x1xf32>
    %c0_5 = arith.constant 0 : index
    %c0_6 = arith.constant 0 : index
    %c0_7 = arith.constant 0 : index
    %6 = vector.load %arg3[%c0_5, %c0_6, %c0_7] : memref<1x48x1xf32, #tpu.memory_space<vmem>>, vector<1x48x1xf32>
    %7 = vector.shape_cast %6 : vector<1x48x1xf32> to vector<48x1xf32>
    %8 = vector.shape_cast %5 : vector<48x1xf32> to vector<1x48x1xf32>
    tpu.vector_store %arg3[%c0_5, %c0_6, %c0_7], %8 {strides = array<i32>} : memref<1x48x1xf32, #tpu.memory_space<vmem>>, vector<1x48x1xf32>,
    %9 = arith.mulf %3, %3 : vector<48x256xf32>
    %cst_8 = arith.constant dense<0.000000e+00> : vector<48xf32>
    %10 = vector.multi_reduction <add>, %9, %cst_8 [1] : vector<48x256xf32> to vector<48xf32>
    %11 = vector.shape_cast %10 : vector<48xf32> to vector<48x1xf32>
    %c0_9 = arith.constant 0 : index
    %c0_10 = arith.constant 0 : index
    %c0_11 = arith.constant 0 : index
    %12 = vector.load %arg4[%c0_9, %c0_10, %c0_11] : memref<1x48x1xf32, #tpu.memory_space<vmem>>, vector<1x48x1xf32>
    %13 = vector.shape_cast %12 : vector<1x48x1xf32> to vector<48x1xf32>
    %14 = vector.shape_cast %11 : vector<48x1xf32> to vector<1x48x1xf32>
    tpu.vector_store %arg4[%c0_9, %c0_10, %c0_11], %14 {strides = array<i32>} : memref<1x48x1xf32, #tpu.memory_space<vmem>>, vector<1x48x1xf32>,
    return
  }
  func.func @transform_0(%arg0: i32) -> (i32, i32, i32) {
    %c0_i32 = arith.constant 0 : i32
    %c0_i32_0 = arith.constant 0 : i32
    %c0_i32_1 = arith.constant 0 : i32
    return %arg0, %c0_i32, %c0_i32_0 : i32, i32, i32
  }
  func.func @transform_1(%arg0: i32) -> (i32, i32) {
    %c0_i32 = arith.constant 0 : i32
    %c0_i32_0 = arith.constant 0 : i32
    %c0_i32_1 = arith.constant 0 : i32
    return %c0_i32, %c0_i32_0 : i32, i32
  }
  func.func @transform_2(%arg0: i32) -> (i32, i32, i32) {
    %c0_i32 = arith.constant 0 : i32
    %c0_i32_0 = arith.constant 0 : i32
    %c0_i32_1 = arith.constant 0 : i32
    return %arg0, %c0_i32, %c0_i32_0 : i32, i32, i32
  }
  func.func @transform_3(%arg0: i32) -> (i32, i32, i32) {
    %c0_i32 = arith.constant 0 : i32
    %c0_i32_0 = arith.constant 0 : i32
    %c0_i32_1 = arith.constant 0 : i32
    return %arg0, %c0_i32, %c0_i32_0 : i32, i32, i32
  }
}

</mosaic_0001>

<bundles_post_ra>
// kernel: tpu_custom_call.1
= control target key start
LH: loop header
LB: loop body
LE: loop exit
PB: predicated region body
PF: predicated region fallthrough
CT: control target
= control target key end

     0   :  { %s503_s12 = smov 0   ;;  %s569_s0 = inlined_call_operand.vmem [shape: f32[2,4,256], index: 0, kind: input, shape index: {}]   ;;  %s570_s1 = inlined_call_operand.vmem [shape: f32[48,4], index: 1, kind: input, shape index: {}]   ;;  %s571_s2 = inlined_call_operand.vmem [shape: f32[2,48,1], index: 2, kind: output, shape index: {0}]   ;;  %s572_s3 = inlined_call_operand.vmem [shape: f32[2,48,1], index: 3, kind: output, shape index: {1}]  }
   0x1 LB: > { %s438_s13 = sadd.s32 4294967295, %s481_s12   ;;  %p442_p0 = scmp.ge.s32.totalorder %s481_s12, 1  ;;  %s481_s12 = sphi %s503_s12, %s14_s12  }
   0x2   : > { %p140_p1 = scmp.lt.s32.totalorder %s481_s12, 3 }
   0x4   : > { %p141_p2 = pnand %p442_p0, %p140_p1 }
   0x5   : > { %p169_p3 = scmp.lt.s32.totalorder (!%p141_p2), %s438_s13, 1 }
   0x6   : > { %144 = sbr.rel (%p141_p2) target bundleno = 309 (0x135), region = 28 }
   0xb   : > { %s574_s13 = smov (!%p169_p3, %s438_s13), 1  ;;  %vm214_vm0 = vcmask 1043456   ;;  %v184_v1 = vld [vmem:[%s570_s1] sm:$0xff]  ;;  %vm195_vm1 = vcmask 31744   ;;  %v187_v2 = vld [vmem:[%s570_s1 + $0x18] sm:$0xff]  ;;  %v185_v6 = vld [vmem:[%s570_s1 + $0x8] sm:$0xff] }
   0xc   : > { %s463_s14 = sshll.u32 %s574_s13, 3  ;;  %v188_v5 = vld [vmem:[%s570_s1 + $0x20] sm:$0xff]  ;;  %v186_v7 = vld [vmem:[%s570_s1 + $0x10] sm:$0xff]  ;;  %v189_v8 = vld [vmem:[%s570_s1 + $0x28] sm:$0xff]  ;;  %s466_s30 = smul.u32 48, %s574_s13  ;;  %vm307_vm2 = vcmask 7168  }
   0xd   : > { %s173_s17 = scalar_lea.vmem %s569_s0, %s463_s14 }
   0xe   : > { %v190_v0 = vld [vmem:[%s173_s17] sm:$0xff]  ;;  %s178_s6 = scalar_lea.vmem %s571_s2, %s466_s30  ;;  %s183_s9 = scalar_lea.vmem %s572_s3, %s466_s30 }
   0xf   : > { %192 = vst [vmem:[#allocation1] ss:$2 sm:$0xff] %v190_v0 }
  0x16   : > { %v193_v3 = vld.sshfl [vmem:[#allocation1] sm:$0xff pattern:$0x75316420]  ;;  %v194_v4 = vld.sshfl [vmem:[#allocation1 + $0x8] sm:$0xff pattern:$0x75316420] }
  0x17   : > { %447 = vmatpush.msk.msra.mxu0 %vm214_vm0, %v193_v3  ;;  %464 = vmatpush.msk.msra.mxu2 %vm214_vm0, %v193_v3 }
  0x18   : > { %454 = vmatpush.msk.msra.mxu1 %vm214_vm0, %v194_v4  ;;  %465 = vmatpush.msk.msra.mxu3 %vm214_vm0, %v194_v4 }
  0x19   : > { %448 = vmatmul.msk.f32.vlgmr.msra.gmra.mxu0 %vm195_vm1, %v184_v1  ;;  %451 = vmatmul.msk.f32.vlgmr.msra.gmra.mxu2 %vm195_vm1, %v187_v2 }
  0x1a   : > { %455 = vmatmul.msk.f32.vlgmr.msra.gmra.mxu1 %vm195_vm1, %v184_v1  ;;  %458 = vmatmul.msk.f32.vlgmr.msra.gmra.mxu3 %vm195_vm1, %v187_v2 }
  0x21   : > { %452 = vmatmul.msk.f32.gmra.mxu2 %vm195_vm1, %v188_v5  ;;  %449 = vmatmul.msk.f32.gmra.mxu0 %vm195_vm1, %v185_v6 }
  0x22   : > { %459 = vmatmul.msk.f32.gmra.mxu3 %vm195_vm1, %v188_v5  ;;  %456 = vmatmul.msk.f32.gmra.mxu1 %vm195_vm1, %v185_v6 }
  0x29   : > { %450 = vmatmul.msk.f32.gmra.mxu0 %vm195_vm1, %v186_v7  ;;  %453 = vmatmul.msk.f32.gmra.mxu2 %vm195_vm1, %v189_v8 }
  0x2a   : > { %457 = vmatmul.msk.f32.gmra.mxu1 %vm195_vm1, %v186_v7  ;;  %460 = vmatmul.msk.f32.gmra.mxu3 %vm195_vm1, %v189_v8 }
  0x96   : > { %v236_v9 = vpop.f32.mrf.mxu0 }
  0x97   : > { %v271_v10 = vpop.f32.mrf.mxu1  ;;  %v314_v12 = vmul.f32 %v236_v9, %v236_v9 }
  0x98   : > { %v289_v11 = vadd.f32 %v271_v10, %v236_v9  ;;  %v315_v13 = vmul.f32 %v271_v10, %v271_v10 }
  0x9a   : > { %290 = vadd.xlane.f32.xlu0 %v289_v11  ;;  %v326_v19 = vadd.f32 %v315_v13, %v314_v12 }
  0x9c   : > { %v245_v14 = vpop.f32.mrf.mxu2 }
  0x9d   : > { %v280_v15 = vpop.f32.mrf.mxu3  ;;  %v320_v31 = vmul.f32 %v245_v14, %v245_v14 }
  0x9e   : > { %v298_v16 = vadd.f32 %v280_v15, %v245_v14  ;;  %v239_v17 = vpop.f32.mrf.mxu0  ;;  %v321_v32 = vmul.f32 %v280_v15, %v280_v15 }
  0x9f   : > { %v274_v18 = vpop.f32.mrf.mxu1  ;;  %v316_v20 = vmul.f32 %v239_v17, %v239_v17 }
  0xa0   : > { %299 = vadd.xlane.f32.xlu1 %v298_v16  ;;  %v317_v21 = vmul.f32 %v274_v18, %v274_v18  ;;  %v292_v28 = vadd.f32 %v274_v18, %v239_v17  ;;  %v335_v35 = vadd.f32 %v321_v32, %v320_v31 }
  0xa2   : > { %327 = vadd.xlane.f32.xlu0 %v326_v19  ;;  %v329_v23 = vadd.f32 %v317_v21, %v316_v20 }
  0xa4   : > { %v248_v22 = vpop.f32.mrf.mxu2 }
  0xa5   : > { %v283_v24 = vpop.f32.mrf.mxu3  ;;  %v322_v38 = vmul.f32 %v248_v22, %v248_v22 }
  0xa6   : > { %v301_v25 = vadd.f32 %v283_v24, %v248_v22  ;;  %v242_v26 = vpop.f32.mrf.mxu0  ;;  %v323_v39 = vmul.f32 %v283_v24, %v283_v24 }
  0xa7   : > { %v277_v27 = vpop.f32.mrf.mxu1  ;;  %v318_v29 = vmul.f32 %v242_v26, %v242_v26 }
  0xa8   : > { %302 = vadd.xlane.f32.xlu2 %v301_v25  ;;  %330 = vadd.xlane.f32.xlu1 %v329_v23  ;;  %v319_v30 = vmul.f32 %v277_v27, %v277_v27  ;;  %v295_v34 = vadd.f32 %v277_v27, %v242_v26  ;;  %v338_v41 = vadd.f32 %v323_v39, %v322_v38 }
  0xaa   : > { %293 = vadd.xlane.f32.xlu0 %v292_v28  ;;  %v332_v33 = vadd.f32 %v319_v30, %v318_v29 }
  0xac   : > { %v251_v36 = vpop.f32.mrf.mxu2 }
  0xad   : > { %v286_v37 = vpop.f32.mrf.mxu3  ;;  %v324_v42 = vmul.f32 %v251_v36, %v251_v36 }
  0xae   : > { %v304_v40 = vadd.f32 %v286_v37, %v251_v36  ;;  %v325_v43 = vmul.f32 %v286_v37, %v286_v37 }
  0xb0   : > { %333 = vadd.xlane.f32.xlu2 %v332_v33  ;;  %296 = vadd.xlane.f32.xlu1 %v295_v34  ;;  %v341_v44 = vadd.f32 %v325_v43, %v324_v42 }
  0xb2   : > { %336 = vadd.xlane.f32.xlu0 %v335_v35 }
  0xb8   : > { %305 = vadd.xlane.f32.xlu2 %v304_v40  ;;  %339 = vadd.xlane.f32.xlu1 %v338_v41 }
  0xc0   : > { %342 = vadd.xlane.f32.xlu2 %v341_v44 }
 0x10d   : > { %v291_v45 = vpop.xlane.xlu0 %290 }
 0x10e   : > { %308 = vst.msk [vmem:[%s178_s6] sm:$0xff] %vm307_vm2, %v291_v45 }
 0x113   : > { %v300_v46 = vpop.xlane.xlu1 %299 }
 0x114   : > { %311 = vst.msk [vmem:[%s178_s6 + $0x18] sm:$0xff] %vm307_vm2, %v300_v46 }
 0x115   : > { %v328_v47 = vpop.xlane.xlu0 %327 }
 0x116   : > { %344 = vst.msk [vmem:[%s183_s9] sm:$0xff] %vm307_vm2, %v328_v47 }
 0x11b   : > { %v303_v48 = vpop.xlane.xlu2 %302  ;;  %v331_v49 = vpop.xlane.xlu1 %330 }
 0x11c   : > { %312 = vst.msk [vmem:[%s178_s6 + $0x20] sm:$0xff] %vm307_vm2, %v303_v48 }
 0x11d   : > { %345 = vst.msk [vmem:[%s183_s9 + $0x8] sm:$0xff] %vm307_vm2, %v331_v49  ;;  %v294_v50 = vpop.xlane.xlu0 %293 }
 0x11e   : > { %309 = vst.msk [vmem:[%s178_s6 + $0x8] sm:$0xff] %vm307_vm2, %v294_v50 }
 0x123   : > { %v334_v51 = vpop.xlane.xlu2 %333  ;;  %v297_v52 = vpop.xlane.xlu1 %296 }
 0x124   : > { %346 = vst.msk [vmem:[%s183_s9 + $0x10] sm:$0xff] %vm307_vm2, %v334_v51 }
 0x125   : > { %310 = vst.msk [vmem:[%s178_s6 + $0x10] sm:$0xff] %vm307_vm2, %v297_v52  ;;  %v337_v53 = vpop.xlane.xlu0 %336 }
 0x126   : > { %347 = vst.msk [vmem:[%s183_s9 + $0x18] sm:$0xff] %vm307_vm2, %v337_v53 }
 0x12b   : > { %v306_v54 = vpop.xlane.xlu2 %305  ;;  %v340_v55 = vpop.xlane.xlu1 %339 }
 0x12c   : > { %313 = vst.msk [vmem:[%s178_s6 + $0x28] sm:$0xff] %vm307_vm2, %v306_v54 }
 0x12d   : > { %348 = vst.msk [vmem:[%s183_s9 + $0x20] sm:$0xff] %vm307_vm2, %v340_v55 }
 0x133   : > { %v343_v56 = vpop.xlane.xlu2 %342 }
 0x134   : > { %349 = vst.msk [vmem:[%s183_s9 + $0x28] sm:$0xff] %vm307_vm2, %v343_v56 }
 0x135 PF: > { %s14_s12 = sadd.s32 1, %s481_s12  }
 0x136   : > { %p11_p4 = scmp.ge.s32.totalorder %s14_s12, 4  }
 0x138   :  { %13 = sbr.rel (!%p11_p4) target bundleno = 1 (0x1), region = 70 }

</bundles_post_ra>
